<compile_context>
chip_gen: v7x
topology: tpu7x:2x2x1
jax: 0.10.0
libtpu: 0.0.40
codegen_flags: <defaults>
</compile_context>

<pallas_src>
import jax
import jax.numpy as jnp
from jax.experimental import pallas as pl
from jax.experimental.pallas import tpu as pltpu

# ---- small, module-consistent shapes --------------------------------------
N = 8              # batch_size == number of graph nodes
D_IN = 16          # input_dim
H = 32             # hidden_dim
N_CLS = 5          # num_classes = {"arch": 5}
N_REG = 3          # num_regression_targets
POOL_RATIO = 0.5
K_TOP = max(1, min(int(N * POOL_RATIO), N))   # = 4
LEAKY_ALPHA = 0.2
LANES = 128        # lane width of the packed slab / output row
OUT_PAD = LANES

# ---- packed-slab row offsets (all multiples of 8, lane width = 128) --------
R_WX = 0            # [16,128]  x-stage:  [fe_w1 | gp_w]
R_F0 = 16           # [128,128] fused fe2 + GAT0: blockdiag(fe_w2, [W0|W0a_s|W0a_d])
R_G1 = 144          # [32,128]  GAT1:     [W1 | W1a_s | W1a_d]
R_G2 = 176          # [32,128]  GAT2+pool:[W2@sc_w1 | W2@pr_w | W2a_s | W2a_d]
R_SC2 = 208         # [32,128]  score layer 2 (col 0)
R_CB = 240          # [64,128]  combination Linear(2H,H) (cols 0:H)
R_HEAD = 304        # [128,128] heads [cls_w|reg_w] in rows 0:H, cols 0:8
R_BIAS = 432        # [8,128]   bias rows (see pack_params)
SLAB_ROWS = 440


def _vmem():
    return pl.BlockSpec(memory_space=pltpu.MemorySpace.VMEM)


# ============================================================================
# Single fused kernel: whole NWPA forward (no grid; 2 input DMAs total).
# ============================================================================
def _nwpa_kernel(x_ref, slab_ref, out_ref):
    x = x_ref[...].astype(jnp.float32)                 # [N, D_IN]
    b = slab_ref[R_BIAS:R_BIAS + 8, :]                 # [8, 128] bias rows

    # ---- fused: feature_extractor layer 1 + gnn.input_projection ----------
    z = jnp.dot(x, slab_ref[R_WX:R_WX + D_IN, :],
                preferred_element_type=jnp.float32)    # [N, 128]
    z = jnp.maximum(z + b[0:1, :], 0.0)                # cols 0:H fe, H:2H gnn

    # ---- fused: feature_extractor layer 2 + GAT layer-0 matmul ------------
    # r0 cols: 0:H = fe2 pre-act | H:2H = Wh0 | 2H = f_src0 | 2H+1 = f_dst0
    r0 = jnp.dot(z, slab_ref[R_F0:R_F0 + 128, :],
                 preferred_element_type=jnp.float32)   # [N, 128]

    h_fe2 = jnp.maximum(r0[:, 0:H] + b[1:2, 0:H], 0.0)
    hfeat_mean = jnp.mean(h_fe2, axis=0, keepdims=True)          # [1, H]

    def gat_softmax(f_src, f_dst):
        # adj == all-ones -> plain softmax over dim=1; [N,1]->[1,N] transpose
        # is a single-vreg XLU relayout.
        e = f_src + jnp.transpose(f_dst)                          # [N, N]
        e = jnp.where(e > 0, e, LEAKY_ALPHA * e)                  # LeakyReLU
        e = e - jnp.max(e, axis=1, keepdims=True)
        p = jnp.exp(e)
        inv = pl.reciprocal(jnp.sum(p, axis=1, keepdims=True), approx=True)
        return p * inv

    def elu(v):
        return jnp.where(v > 0, v, jnp.exp(jnp.minimum(v, 0.0)) - 1.0)

    # ---- GAT layer 0 (concat=True -> ELU) ----------------------------------
    att0 = gat_softmax(r0[:, 2 * H:2 * H + 1], r0[:, 2 * H + 1:2 * H + 2])
    h1 = elu(jnp.dot(att0, r0[:, H:2 * H],
                     preferred_element_type=jnp.float32))         # [N, H]

    # ---- GAT layer 1 (concat=True -> ELU) ----------------------------------
    r1 = jnp.dot(h1, slab_ref[R_G1:R_G1 + H, :],
                 preferred_element_type=jnp.float32)              # [N, 128]
    att1 = gat_softmax(r1[:, H:H + 1], r1[:, H + 1:H + 2])
    h2 = elu(jnp.dot(att1, r1[:, 0:H],
                     preferred_element_type=jnp.float32))         # [N, H]

    # ---- GAT layer 2 (no ELU) with pooling weights folded in ---------------
    # r2 cols: 0:H = (h2@W2)@sc_w1 pre | H:2H = (h2@W2)@pr_w pre | 2H,2H+1 = f
    r2 = jnp.dot(h2, slab_ref[R_G2:R_G2 + H, :],
                 preferred_element_type=jnp.float32)              # [N, 128]
    att2 = gat_softmax(r2[:, 2 * H:2 * H + 1], r2[:, 2 * H + 1:2 * H + 2])
    sp = jnp.dot(att2, r2[:, 0:2 * H],
                 preferred_element_type=jnp.float32)              # [N, 2H]

    s1 = jnp.tanh(sp[:, 0:H] + b[2:3, 0:H])                       # score MLP
    proj = jnp.maximum(sp[:, H:2 * H] + b[2:3, H:2 * H], 0.0)     # projection
    s2 = jnp.dot(s1, slab_ref[R_SC2:R_SC2 + H, :],
                 preferred_element_type=jnp.float32)[:, 0:1] + b[5:6, 0:1]
    # NOTE: reference applies sigmoid(s2) before top-k; sigmoid is monotone
    # and the score is only used for ranking -> dropped (EUP pass off the
    # critical path).

    # ---- in-kernel top-k via rank matrix (tie-break: lower index first) ----
    s_row = jnp.transpose(s2)                                     # [1, N]
    gt = s_row > s2                                               # s_j > s_i
    eq = s_row == s2
    j_idx = jax.lax.broadcasted_iota(jnp.int32, (N, N), 1)
    i_idx = jax.lax.broadcasted_iota(jnp.int32, (N, N), 0)
    before = jnp.logical_and(eq, j_idx < i_idx)
    rank = jnp.sum(jnp.where(jnp.logical_or(gt, before), 1.0, 0.0),
                   axis=1, keepdims=True)                         # [N, 1]
    sel = jnp.where(rank < float(K_TOP), 1.0 / float(K_TOP), 0.0)
    graph_rep = jnp.sum(sel * proj, axis=0, keepdims=True)        # [1, H]

    # ---- combination Linear(2H -> H) + ReLU ---------------------------------
    comb_in = jnp.concatenate([hfeat_mean, graph_rep], axis=1)    # [1, 2H]
    hc = jnp.maximum(
        jnp.dot(comb_in, slab_ref[R_CB:R_CB + 2 * H, :],
                preferred_element_type=jnp.float32) + b[3:4, :], 0.0)  # [1,128]

    # ---- merged heads (cls | reg), natively padded to 128 output lanes -----
    heads = jnp.dot(hc, slab_ref[R_HEAD:R_HEAD + 128, :],
                    preferred_element_type=jnp.float32) + b[4:5, :]    # [1,128]

    # batch_size > 1 branch of the torch module: same vector for every row.
    out_ref[...] = jnp.broadcast_to(heads, (N, OUT_PAD))


# ============================================================================
# Host-side wrapper
# ============================================================================
_COST = pl.CostEstimate(flops=500_000, transcendentals=1_500,
                        bytes_accessed=230_000)


@jax.jit
def nwpa_forward(x, slab):
    out = pl.pallas_call(
        _nwpa_kernel,
        out_shape=jax.ShapeDtypeStruct((N, OUT_PAD), jnp.float32),
        in_specs=[_vmem(), _vmem()],
        out_specs=_vmem(),
        cost_estimate=_COST,
    )(x, slab)
    return {"classification": {"arch": out[:, :N_CLS]},
            "regression": out[:, N_CLS:N_CLS + N_REG]}


# ============================================================================
# Parameters: raw (torch-layout-equivalent) init + packing into ONE slab
# ============================================================================
def init_params(key):
    """Deterministic synthetic parameters (shapes match the torch module,
    every nn.Linear weight already stored as [in_features, out_features])."""
    ks = jax.random.split(key, 32)
    i = iter(range(32))

    def w(shape, scale=0.1):
        return (scale * jax.random.normal(ks[next(i)], shape)).astype(jnp.float32)

    p = {}
    # feature_extractor: Linear(D_IN,H), Linear(H,H)
    p["fe_w1"], p["fe_b1"] = w((D_IN, H)), w((1, H))
    p["fe_w2"], p["fe_b2"] = w((H, H)), w((1, H))
    # gnn.input_projection: Linear(D_IN,H)
    p["gp_w"], p["gp_b"] = w((D_IN, H)), w((1, H))
    # 3 GAT layers: W Linear(H,H,no bias); a Linear(2H,1,no bias) split src/dst
    for l in range(3):
        p[f"g_w{l}"] = w((H, H))
        p[f"g_as{l}"] = w((H, 1))
        p[f"g_ad{l}"] = w((H, 1))
    # pooling.score_layer: Linear(H,H) -> Tanh -> Linear(H,1)
    p["sc_w1"], p["sc_b1"] = w((H, H)), w((1, H))
    p["sc_w2"], p["sc_b2"] = w((H, 1)), w((1, 1))
    # pooling.projection: Linear(H,H)
    p["pr_w"], p["pr_b"] = w((H, H)), w((1, H))
    # combination: Linear(2H,H) split into the two H-row halves
    p["cb_wa"], p["cb_wb"], p["cb_b"] = w((H, H)), w((H, H)), w((1, H))
    # heads
    p["cls_w"], p["cls_b"] = w((H, N_CLS)), w((1, N_CLS))
    p["reg_w"], p["reg_b"] = w((H, N_REG)), w((1, N_REG))
    return p


def pack_params(p):
    """Pack every weight/bias into one lane-dense [SLAB_ROWS, 128] f32 slab.

    Host-side fp reassociations (mathematically identical to the reference):
      * W@a_src / W@a_dst folded into each GAT layer's weight block,
      * fe_w2 + GAT-0 merged into one block-structured matmul weight,
      * W2 @ [sc_w1 | pr_w] folded into the GAT-2 block (h_gnn never needed).
    """
    S = jnp.zeros((SLAB_ROWS, LANES), jnp.float32)

    # x-stage: z = x @ [fe_w1 | gp_w]
    S = S.at[R_WX:R_WX + D_IN, 0:H].set(p["fe_w1"])
    S = S.at[R_WX:R_WX + D_IN, H:2 * H].set(p["gp_w"])

    # fused fe2 + GAT0 block (rows 0:H act on fe hidden, H:2H on gnn hidden)
    S = S.at[R_F0:R_F0 + H, 0:H].set(p["fe_w2"])
    S = S.at[R_F0 + H:R_F0 + 2 * H, H:2 * H].set(p["g_w0"])
    S = S.at[R_F0 + H:R_F0 + 2 * H, 2 * H:2 * H + 1].set(p["g_w0"] @ p["g_as0"])
    S = S.at[R_F0 + H:R_F0 + 2 * H, 2 * H + 1:2 * H + 2].set(p["g_w0"] @ p["g_ad0"])

    # GAT layer 1: [W1 | W1@a_src | W1@a_dst]
    S = S.at[R_G1:R_G1 + H, 0:H].set(p["g_w1"])
    S = S.at[R_G1:R_G1 + H, H:H + 1].set(p["g_w1"] @ p["g_as1"])
    S = S.at[R_G1:R_G1 + H, H + 1:H + 2].set(p["g_w1"] @ p["g_ad1"])

    # GAT layer 2 with pooling folded: [W2@sc_w1 | W2@pr_w | W2@a_src | W2@a_dst]
    S = S.at[R_G2:R_G2 + H, 0:H].set(p["g_w2"] @ p["sc_w1"])
    S = S.at[R_G2:R_G2 + H, H:2 * H].set(p["g_w2"] @ p["pr_w"])
    S = S.at[R_G2:R_G2 + H, 2 * H:2 * H + 1].set(p["g_w2"] @ p["g_as2"])
    S = S.at[R_G2:R_G2 + H, 2 * H + 1:2 * H + 2].set(p["g_w2"] @ p["g_ad2"])

    # score layer 2 (column 0)
    S = S.at[R_SC2:R_SC2 + H, 0:1].set(p["sc_w2"])

    # combination Linear(2H,H): rows 0:H act on mean(h_features), H:2H on h_graph
    S = S.at[R_CB:R_CB + H, 0:H].set(p["cb_wa"])
    S = S.at[R_CB + H:R_CB + 2 * H, 0:H].set(p["cb_wb"])

    # heads [cls_w | reg_w], zero-padded to the full 128-lane output row
    S = S.at[R_HEAD:R_HEAD + H, 0:N_CLS].set(p["cls_w"])
    S = S.at[R_HEAD:R_HEAD + H, N_CLS:N_CLS + N_REG].set(p["reg_w"])

    # bias rows
    rb = R_BIAS
    S = S.at[rb + 0, 0:H].set(p["fe_b1"][0])
    S = S.at[rb + 0, H:2 * H].set(p["gp_b"][0])
    S = S.at[rb + 1, 0:H].set(p["fe_b2"][0])
    S = S.at[rb + 2, 0:H].set(p["sc_b1"][0])
    S = S.at[rb + 2, H:2 * H].set(p["pr_b"][0])
    S = S.at[rb + 3, 0:H].set(p["cb_b"][0])
    S = S.at[rb + 4, 0:N_CLS].set(p["cls_b"][0])
    S = S.at[rb + 4, N_CLS:N_CLS + N_REG].set(p["reg_b"][0])
    S = S.at[rb + 5, 0].set(p["sc_b2"][0, 0])
    return S


if __name__ == "__main__":
    key = jax.random.PRNGKey(0)
    k_x, k_p = jax.random.split(key)
    x = jax.random.normal(k_x, (N, D_IN), dtype=jnp.float32)   # batch['features']
    slab = pack_params(init_params(k_p))

    out = nwpa_forward(x, slab)
    jax.block_until_ready(out)

    assert out["classification"]["arch"].shape == (N, N_CLS)
    assert out["regression"].shape == (N, N_REG)
    print("KERNEL_OK")
</pallas_src>

<mosaic_0001>
module attributes {stable_mosaic.version = 11 : i64} {
  func.func @_nwpa_kernel(%arg0: memref<8x16xf32, #tpu.memory_space<vmem>>, %arg1: memref<440x128xf32, #tpu.memory_space<vmem>>, %arg2: memref<8x128xf32, #tpu.memory_space<vmem>>) attributes {dimension_semantics = [], scalar_prefetch = 0 : i64, scratch_operands = 0 : i64, tpu.core_type = #tpu.core_type<tc>} {
    %c0 = arith.constant 0 : index
    %c0_0 = arith.constant 0 : index
    %0 = vector.load %arg0[%c0, %c0_0] : memref<8x16xf32, #tpu.memory_space<vmem>>, vector<8x16xf32>
    %c432 = arith.constant 432 : index
    %c0_1 = arith.constant 0 : index
    %1 = vector.load %arg1[%c432, %c0_1] : memref<440x128xf32, #tpu.memory_space<vmem>>, vector<8x128xf32>
    %c0_2 = arith.constant 0 : index
    %c0_3 = arith.constant 0 : index
    %2 = vector.load %arg1[%c0_2, %c0_3] : memref<440x128xf32, #tpu.memory_space<vmem>>, vector<16x128xf32>
    %cst = arith.constant dense<0.000000e+00> : vector<8x128xf32>
    %3 = tpu.matmul %0, %2, %cst {dimension_numbers = #tpu.dot_dimension_numbers<[1], [0], [0], [1], [0, 0, 1, 1], [], []>} : vector<8x16xf32>, vector<16x128xf32>, vector<8x128xf32> -> vector<8x128xf32>
    %4 = vector.extract_strided_slice %1 {offsets = [0, 0], sizes = [1, 128], strides = [1, 1]} : vector<8x128xf32> to vector<1x128xf32>
    %5 = vector.broadcast %4 : vector<1x128xf32> to vector<8x128xf32>
    %6 = arith.addf %3, %5 : vector<8x128xf32>
    %cst_4 = arith.constant 0.000000e+00 : f32
    %7 = vector.broadcast %cst_4 : f32 to vector<8x128xf32>
    %8 = arith.maximumf %6, %7 : vector<8x128xf32>
    %c16 = arith.constant 16 : index
    %c0_5 = arith.constant 0 : index
    %9 = vector.load %arg1[%c16, %c0_5] : memref<440x128xf32, #tpu.memory_space<vmem>>, vector<128x128xf32>
    %cst_6 = arith.constant dense<0.000000e+00> : vector<8x128xf32>
    %10 = tpu.matmul %8, %9, %cst_6 {dimension_numbers = #tpu.dot_dimension_numbers<[1], [0], [0], [1], [0, 0, 1, 1], [], []>} : vector<8x128xf32>, vector<128x128xf32>, vector<8x128xf32> -> vector<8x128xf32>
    %11 = vector.extract_strided_slice %10 {offsets = [0, 0], sizes = [8, 32], strides = [1, 1]} : vector<8x128xf32> to vector<8x32xf32>
    %12 = vector.extract_strided_slice %1 {offsets = [1, 0], sizes = [1, 32], strides = [1, 1]} : vector<8x128xf32> to vector<1x32xf32>
    %13 = vector.broadcast %12 : vector<1x32xf32> to vector<8x32xf32>
    %14 = arith.addf %11, %13 : vector<8x32xf32>
    %cst_7 = arith.constant 0.000000e+00 : f32
    %15 = vector.broadcast %cst_7 : f32 to vector<8x32xf32>
    %16 = arith.maximumf %14, %15 : vector<8x32xf32>
    %cst_8 = arith.constant dense<0.000000e+00> : vector<32xf32>
    %17 = vector.multi_reduction <add>, %16, %cst_8 [0] : vector<8x32xf32> to vector<32xf32>
    %18 = vector.shape_cast %17 : vector<32xf32> to vector<1x32xf32>
    %cst_9 = arith.constant 8.000000e+00 : f32
    %19 = vector.broadcast %cst_9 : f32 to vector<1x32xf32>
    %20 = arith.divf %18, %19 : vector<1x32xf32>
    %21 = vector.extract_strided_slice %10 {offsets = [0, 64], sizes = [8, 1], strides = [1, 1]} : vector<8x128xf32> to vector<8x1xf32>
    %22 = vector.extract_strided_slice %10 {offsets = [0, 65], sizes = [8, 1], strides = [1, 1]} : vector<8x128xf32> to vector<8x1xf32>
    %23 = tpu.transpose %22, [1, 0] : vector<8x1xf32> -> vector<1x8xf32>
    %24 = vector.broadcast %21 : vector<8x1xf32> to vector<8x8xf32>
    %25 = vector.broadcast %23 : vector<1x8xf32> to vector<8x8xf32>
    %26 = arith.addf %24, %25 : vector<8x8xf32>
    %cst_10 = arith.constant 0.000000e+00 : f32
    %27 = vector.broadcast %cst_10 : f32 to vector<8x8xf32>
    %28 = arith.cmpf ogt, %26, %27 : vector<8x8xf32>
    %cst_11 = arith.constant 2.000000e-01 : f32
    %29 = vector.broadcast %cst_11 : f32 to vector<8x8xf32>
    %30 = arith.mulf %29, %26 : vector<8x8xf32>
    %31 = arith.select %28, %26, %30 : vector<8x8xi1>, vector<8x8xf32>
    %cst_12 = arith.constant dense<0xFF800000> : vector<8xf32>
    %32 = vector.multi_reduction <maximumf>, %31, %cst_12 [1] : vector<8x8xf32> to vector<8xf32>
    %33 = vector.shape_cast %32 : vector<8xf32> to vector<8x1xf32>
    %34 = vector.broadcast %33 : vector<8x1xf32> to vector<8x8xf32>
    %35 = arith.subf %31, %34 : vector<8x8xf32>
    %36 = math.exp %35 : vector<8x8xf32>
    %cst_13 = arith.constant dense<0.000000e+00> : vector<8xf32>
    %37 = vector.multi_reduction <add>, %36, %cst_13 [1] : vector<8x8xf32> to vector<8xf32>
    %38 = vector.shape_cast %37 : vector<8xf32> to vector<8x1xf32>
    %39 = tpu.reciprocal %38 {approx = true} : vector<8x1xf32> -> vector<8x1xf32>
    %40 = vector.broadcast %39 : vector<8x1xf32> to vector<8x8xf32>
    %41 = arith.mulf %36, %40 : vector<8x8xf32>
    %42 = vector.extract_strided_slice %10 {offsets = [0, 32], sizes = [8, 32], strides = [1, 1]} : vector<8x128xf32> to vector<8x32xf32>
    %cst_14 = arith.constant dense<0.000000e+00> : vector<8x32xf32>
    %43 = tpu.matmul %41, %42, %cst_14 {dimension_numbers = #tpu.dot_dimension_numbers<[1], [0], [0], [1], [0, 0, 1, 1], [], []>} : vector<8x8xf32>, vector<8x32xf32>, vector<8x32xf32> -> vector<8x32xf32>
    %cst_15 = arith.constant 0.000000e+00 : f32
    %44 = vector.broadcast %cst_15 : f32 to vector<8x32xf32>
    %45 = arith.cmpf ogt, %43, %44 : vector<8x32xf32>
    %cst_16 = arith.constant 0.000000e+00 : f32
    %46 = vector.broadcast %cst_16 : f32 to vector<8x32xf32>
    %47 = arith.minimumf %43, %46 : vector<8x32xf32>
    %48 = math.exp %47 : vector<8x32xf32>
    %cst_17 = arith.constant 1.000000e+00 : f32
    %49 = vector.broadcast %cst_17 : f32 to vector<8x32xf32>
    %50 = arith.subf %48, %49 : vector<8x32xf32>
    %51 = arith.select %45, %43, %50 : vector<8x32xi1>, vector<8x32xf32>
    %c144 = arith.constant 144 : index
    %c0_18 = arith.constant 0 : index
    %52 = vector.load %arg1[%c144, %c0_18] : memref<440x128xf32, #tpu.memory_space<vmem>>, vector<32x128xf32>
    %cst_19 = arith.constant dense<0.000000e+00> : vector<8x128xf32>
    %53 = tpu.matmul %51, %52, %cst_19 {dimension_numbers = #tpu.dot_dimension_numbers<[1], [0], [0], [1], [0, 0, 1, 1], [], []>} : vector<8x32xf32>, vector<32x128xf32>, vector<8x128xf32> -> vector<8x128xf32>
    %54 = vector.extract_strided_slice %53 {offsets = [0, 32], sizes = [8, 1], strides = [1, 1]} : vector<8x128xf32> to vector<8x1xf32>
    %55 = vector.extract_strided_slice %53 {offsets = [0, 33], sizes = [8, 1], strides = [1, 1]} : vector<8x128xf32> to vector<8x1xf32>
    %56 = tpu.transpose %55, [1, 0] : vector<8x1xf32> -> vector<1x8xf32>
    %57 = vector.broadcast %54 : vector<8x1xf32> to vector<8x8xf32>
    %58 = vector.broadcast %56 : vector<1x8xf32> to vector<8x8xf32>
    %59 = arith.addf %57, %58 : vector<8x8xf32>
    %cst_20 = arith.constant 0.000000e+00 : f32
    %60 = vector.broadcast %cst_20 : f32 to vector<8x8xf32>
    %61 = arith.cmpf ogt, %59, %60 : vector<8x8xf32>
    %cst_21 = arith.constant 2.000000e-01 : f32
    %62 = vector.broadcast %cst_21 : f32 to vector<8x8xf32>
    %63 = arith.mulf %62, %59 : vector<8x8xf32>
    %64 = arith.select %61, %59, %63 : vector<8x8xi1>, vector<8x8xf32>
    %cst_22 = arith.constant dense<0xFF800000> : vector<8xf32>
    %65 = vector.multi_reduction <maximumf>, %64, %cst_22 [1] : vector<8x8xf32> to vector<8xf32>
    %66 = vector.shape_cast %65 : vector<8xf32> to vector<8x1xf32>
    %67 = vector.broadcast %66 : vector<8x1xf32> to vector<8x8xf32>
    %68 = arith.subf %64, %67 : vector<8x8xf32>
    %69 = math.exp %68 : vector<8x8xf32>
    %cst_23 = arith.constant dense<0.000000e+00> : vector<8xf32>
    %70 = vector.multi_reduction <add>, %69, %cst_23 [1] : vector<8x8xf32> to vector<8xf32>
    %71 = vector.shape_cast %70 : vector<8xf32> to vector<8x1xf32>
    %72 = tpu.reciprocal %71 {approx = true} : vector<8x1xf32> -> vector<8x1xf32>
    %73 = vector.broadcast %72 : vector<8x1xf32> to vector<8x8xf32>
    %74 = arith.mulf %69, %73 : vector<8x8xf32>
    %75 = vector.extract_strided_slice %53 {offsets = [0, 0], sizes = [8, 32], strides = [1, 1]} : vector<8x128xf32> to vector<8x32xf32>
    %cst_24 = arith.constant dense<0.000000e+00> : vector<8x32xf32>
    %76 = tpu.matmul %74, %75, %cst_24 {dimension_numbers = #tpu.dot_dimension_numbers<[1], [0], [0], [1], [0, 0, 1, 1], [], []>} : vector<8x8xf32>, vector<8x32xf32>, vector<8x32xf32> -> vector<8x32xf32>
    %cst_25 = arith.constant 0.000000e+00 : f32
    %77 = vector.broadcast %cst_25 : f32 to vector<8x32xf32>
    %78 = arith.cmpf ogt, %76, %77 : vector<8x32xf32>
    %cst_26 = arith.constant 0.000000e+00 : f32
    %79 = vector.broadcast %cst_26 : f32 to vector<8x32xf32>
    %80 = arith.minimumf %76, %79 : vector<8x32xf32>
    %81 = math.exp %80 : vector<8x32xf32>
    %cst_27 = arith.constant 1.000000e+00 : f32
    %82 = vector.broadcast %cst_27 : f32 to vector<8x32xf32>
    %83 = arith.subf %81, %82 : vector<8x32xf32>
    %84 = arith.select %78, %76, %83 : vector<8x32xi1>, vector<8x32xf32>
    %c176 = arith.constant 176 : index
    %c0_28 = arith.constant 0 : index
    %85 = vector.load %arg1[%c176, %c0_28] : memref<440x128xf32, #tpu.memory_space<vmem>>, vector<32x128xf32>
    %cst_29 = arith.constant dense<0.000000e+00> : vector<8x128xf32>
    %86 = tpu.matmul %84, %85, %cst_29 {dimension_numbers = #tpu.dot_dimension_numbers<[1], [0], [0], [1], [0, 0, 1, 1], [], []>} : vector<8x32xf32>, vector<32x128xf32>, vector<8x128xf32> -> vector<8x128xf32>
    %87 = vector.extract_strided_slice %86 {offsets = [0, 64], sizes = [8, 1], strides = [1, 1]} : vector<8x128xf32> to vector<8x1xf32>
    %88 = vector.extract_strided_slice %86 {offsets = [0, 65], sizes = [8, 1], strides = [1, 1]} : vector<8x128xf32> to vector<8x1xf32>
    %89 = tpu.transpose %88, [1, 0] : vector<8x1xf32> -> vector<1x8xf32>
    %90 = vector.broadcast %87 : vector<8x1xf32> to vector<8x8xf32>
    %91 = vector.broadcast %89 : vector<1x8xf32> to vector<8x8xf32>
    %92 = arith.addf %90, %91 : vector<8x8xf32>
    %cst_30 = arith.constant 0.000000e+00 : f32
    %93 = vector.broadcast %cst_30 : f32 to vector<8x8xf32>
    %94 = arith.cmpf ogt, %92, %93 : vector<8x8xf32>
    %cst_31 = arith.constant 2.000000e-01 : f32
    %95 = vector.broadcast %cst_31 : f32 to vector<8x8xf32>
    %96 = arith.mulf %95, %92 : vector<8x8xf32>
    %97 = arith.select %94, %92, %96 : vector<8x8xi1>, vector<8x8xf32>
    %cst_32 = arith.constant dense<0xFF800000> : vector<8xf32>
    %98 = vector.multi_reduction <maximumf>, %97, %cst_32 [1] : vector<8x8xf32> to vector<8xf32>
    %99 = vector.shape_cast %98 : vector<8xf32> to vector<8x1xf32>
    %100 = vector.broadcast %99 : vector<8x1xf32> to vector<8x8xf32>
    %101 = arith.subf %97, %100 : vector<8x8xf32>
    %102 = math.exp %101 : vector<8x8xf32>
    %cst_33 = arith.constant dense<0.000000e+00> : vector<8xf32>
    %103 = vector.multi_reduction <add>, %102, %cst_33 [1] : vector<8x8xf32> to vector<8xf32>
    %104 = vector.shape_cast %103 : vector<8xf32> to vector<8x1xf32>
    %105 = tpu.reciprocal %104 {approx = true} : vector<8x1xf32> -> vector<8x1xf32>
    %106 = vector.broadcast %105 : vector<8x1xf32> to vector<8x8xf32>
    %107 = arith.mulf %102, %106 : vector<8x8xf32>
    %108 = vector.extract_strided_slice %86 {offsets = [0, 0], sizes = [8, 64], strides = [1, 1]} : vector<8x128xf32> to vector<8x64xf32>
    %cst_34 = arith.constant dense<0.000000e+00> : vector<8x64xf32>
    %109 = tpu.matmul %107, %108, %cst_34 {dimension_numbers = #tpu.dot_dimension_numbers<[1], [0], [0], [1], [0, 0, 1, 1], [], []>} : vector<8x8xf32>, vector<8x64xf32>, vector<8x64xf32> -> vector<8x64xf32>
    %110 = vector.extract_strided_slice %109 {offsets = [0, 0], sizes = [8, 32], strides = [1, 1]} : vector<8x64xf32> to vector<8x32xf32>
    %111 = vector.extract_strided_slice %1 {offsets = [2, 0], sizes = [1, 32], strides = [1, 1]} : vector<8x128xf32> to vector<1x32xf32>
    %112 = vector.broadcast %111 : vector<1x32xf32> to vector<8x32xf32>
    %113 = arith.addf %110, %112 : vector<8x32xf32>
    %114 = math.tanh %113 : vector<8x32xf32>
    %115 = vector.extract_strided_slice %109 {offsets = [0, 32], sizes = [8, 32], strides = [1, 1]} : vector<8x64xf32> to vector<8x32xf32>
    %116 = vector.extract_strided_slice %1 {offsets = [2, 32], sizes = [1, 32], strides = [1, 1]} : vector<8x128xf32> to vector<1x32xf32>
    %117 = vector.broadcast %116 : vector<1x32xf32> to vector<8x32xf32>
    %118 = arith.addf %115, %117 : vector<8x32xf32>
    %cst_35 = arith.constant 0.000000e+00 : f32
    %119 = vector.broadcast %cst_35 : f32 to vector<8x32xf32>
    %120 = arith.maximumf %118, %119 : vector<8x32xf32>
    %c208 = arith.constant 208 : index
    %c0_36 = arith.constant 0 : index
    %121 = vector.load %arg1[%c208, %c0_36] : memref<440x128xf32, #tpu.memory_space<vmem>>, vector<32x128xf32>
    %cst_37 = arith.constant dense<0.000000e+00> : vector<8x128xf32>
    %122 = tpu.matmul %114, %121, %cst_37 {dimension_numbers = #tpu.dot_dimension_numbers<[1], [0], [0], [1], [0, 0, 1, 1], [], []>} : vector<8x32xf32>, vector<32x128xf32>, vector<8x128xf32> -> vector<8x128xf32>
    %123 = vector.extract_strided_slice %122 {offsets = [0, 0], sizes = [8, 1], strides = [1, 1]} : vector<8x128xf32> to vector<8x1xf32>
    %124 = vector.extract_strided_slice %1 {offsets = [5, 0], sizes = [1, 1], strides = [1, 1]} : vector<8x128xf32> to vector<1x1xf32>
    %125 = vector.broadcast %124 : vector<1x1xf32> to vector<8x1xf32>
    %126 = arith.addf %123, %125 : vector<8x1xf32>
    %127 = tpu.transpose %126, [1, 0] : vector<8x1xf32> -> vector<1x8xf32>
    %128 = vector.broadcast %127 : vector<1x8xf32> to vector<8x8xf32>
    %129 = vector.broadcast %126 : vector<8x1xf32> to vector<8x8xf32>
    %130 = arith.cmpf ogt, %128, %129 : vector<8x8xf32>
    %131 = vector.broadcast %127 : vector<1x8xf32> to vector<8x8xf32>
    %132 = vector.broadcast %126 : vector<8x1xf32> to vector<8x8xf32>
    %133 = arith.cmpf oeq, %131, %132 : vector<8x8xf32>
    %134 = tpu.iota {dimensions = array<i32: 1>} : vector<8x8xi32>
    %135 = tpu.iota {dimensions = array<i32: 0>} : vector<8x8xi32>
    %136 = arith.cmpi slt, %134, %135 : vector<8x8xi32>
    %137 = arith.andi %133, %136 : vector<8x8xi1>
    %138 = arith.ori %130, %137 : vector<8x8xi1>
    %cst_38 = arith.constant 1.000000e+00 : f32
    %cst_39 = arith.constant 0.000000e+00 : f32
    %139 = vector.broadcast %cst_38 : f32 to vector<8x8xf32>
    %140 = vector.broadcast %cst_39 : f32 to vector<8x8xf32>
    %141 = arith.select %138, %139, %140 : vector<8x8xi1>, vector<8x8xf32>
    %cst_40 = arith.constant dense<0.000000e+00> : vector<8xf32>
    %142 = vector.multi_reduction <add>, %141, %cst_40 [1] : vector<8x8xf32> to vector<8xf32>
    %143 = vector.shape_cast %142 : vector<8xf32> to vector<8x1xf32>
    %cst_41 = arith.constant 4.000000e+00 : f32
    %144 = vector.broadcast %cst_41 : f32 to vector<8x1xf32>
    %145 = arith.cmpf olt, %143, %144 : vector<8x1xf32>
    %cst_42 = arith.constant 2.500000e-01 : f32
    %cst_43 = arith.constant 0.000000e+00 : f32
    %146 = vector.broadcast %cst_42 : f32 to vector<8x1xf32>
    %147 = vector.broadcast %cst_43 : f32 to vector<8x1xf32>
    %148 = arith.select %145, %146, %147 : vector<8x1xi1>, vector<8x1xf32>
    %149 = vector.broadcast %148 : vector<8x1xf32> to vector<8x32xf32>
    %150 = arith.mulf %149, %120 : vector<8x32xf32>
    %cst_44 = arith.constant dense<0.000000e+00> : vector<32xf32>
    %151 = vector.multi_reduction <add>, %150, %cst_44 [0] : vector<8x32xf32> to vector<32xf32>
    %152 = vector.shape_cast %151 : vector<32xf32> to vector<1x32xf32>
    %153 = tpu.concatenate %20, %152 in 1 : vector<1x32xf32>, vector<1x32xf32> -> vector<1x64xf32>
    %c240 = arith.constant 240 : index
    %c0_45 = arith.constant 0 : index
    %154 = vector.load %arg1[%c240, %c0_45] : memref<440x128xf32, #tpu.memory_space<vmem>>, vector<64x128xf32>
    %cst_46 = arith.constant dense<0.000000e+00> : vector<1x128xf32>
    %155 = tpu.matmul %153, %154, %cst_46 {dimension_numbers = #tpu.dot_dimension_numbers<[1], [0], [0], [1], [0, 0, 1, 1], [], []>} : vector<1x64xf32>, vector<64x128xf32>, vector<1x128xf32> -> vector<1x128xf32>
    %156 = vector.extract_strided_slice %1 {offsets = [3, 0], sizes = [1, 128], strides = [1, 1]} : vector<8x128xf32> to vector<1x128xf32>
    %157 = arith.addf %155, %156 : vector<1x128xf32>
    %cst_47 = arith.constant 0.000000e+00 : f32
    %158 = vector.broadcast %cst_47 : f32 to vector<1x128xf32>
    %159 = arith.maximumf %157, %158 : vector<1x128xf32>
    %c304 = arith.constant 304 : index
    %c0_48 = arith.constant 0 : index
    %160 = vector.load %arg1[%c304, %c0_48] : memref<440x128xf32, #tpu.memory_space<vmem>>, vector<128x128xf32>
    %cst_49 = arith.constant dense<0.000000e+00> : vector<1x128xf32>
    %161 = tpu.matmul %159, %160, %cst_49 {dimension_numbers = #tpu.dot_dimension_numbers<[1], [0], [0], [1], [0, 0, 1, 1], [], []>} : vector<1x128xf32>, vector<128x128xf32>, vector<1x128xf32> -> vector<1x128xf32>
    %162 = vector.extract_strided_slice %1 {offsets = [4, 0], sizes = [1, 128], strides = [1, 1]} : vector<8x128xf32> to vector<1x128xf32>
    %163 = arith.addf %161, %162 : vector<1x128xf32>
    %164 = vector.shape_cast %163 : vector<1x128xf32> to vector<1x128xf32>
    %165 = vector.broadcast %164 : vector<1x128xf32> to vector<8x128xf32>
    %c0_50 = arith.constant 0 : index
    %c0_51 = arith.constant 0 : index
    %166 = vector.load %arg2[%c0_50, %c0_51] : memref<8x128xf32, #tpu.memory_space<vmem>>, vector<8x128xf32>
    tpu.vector_store %arg2[%c0_50, %c0_51], %165 {strides = array<i32>} : memref<8x128xf32, #tpu.memory_space<vmem>>, vector<8x128xf32>,
    return
  }
}

</mosaic_0001>

<bundles_post_ra>
// kernel: nwpa_forward.1
= control target key start
LH: loop header
LB: loop body
LE: loop exit
PB: predicated region body
PF: predicated region fallthrough
CT: control target
= control target key end

     0   :  { %7 = vsyncpa [#allocation3], 0  ;;  %s1682_s0 = inlined_call_operand.hbm [shape: f32[8,16], index: 0, kind: input, shape index: {}]   ;;  %s1683_s1 = inlined_call_operand.hbm [shape: f32[440,128], index: 1, kind: input, shape index: {}]   ;;  %s1684_s2 = inlined_call_operand.vmem [shape: f32[8,128], index: 2, kind: output, shape index: {}]  }
   0x1   :  { %8 = vsyncpa [#allocation5], 0  ;;  %s1514_s9 = smov [#allocation2]   ;;  %s1515_s11 = smov [#allocation4]  }
   0x2   :  { %s15_s10 = sshll.u32 %s1514_s9, 4  ;;  %s24_s12 = sshll.u32 %s1515_s11, 4  ;;  %s16_s10 = int_to_ptr.vmem [resolvable:$true] %s15_s10  ;;  %s1542_s12 = int_to_ptr.vmem [resolvable:$true] %s24_s12 }
   0x3   :  { %s1466_s15 = scalar_lea.hbm %s1682_s0, 128 }
   0x4   :  { %p1467_p0 = scmp.ne.s32.totalorder %s1682_s0, %s1466_s15  ;;  %p1470_p1 = scmp.lt.u32.totalorder %s1466_s15, %s1682_s0 }
   0x6   :  { %p1472_p2 = pnand %p1470_p1, %p1467_p0 }
   0x8   :  { %1475 = shalt.err (!%p1472_p2)
}
   0x9   :  { %s1476_s20 = scalar_lea.vmem %s16_s10, 128  ;;  %p1481_p4 = scmp.lt.s32.totalorder %s16_s10, %s16_s10 }
   0xa   :  { %p1477_p3 = scmp.ne.s32.totalorder %s16_s10, %s1476_s20  ;;  %p1482_p5 = scmp.lt.s32.totalorder %s1476_s20, %s1476_s20 }
   0xc   :  { %p1483_p6 = por %p1482_p5, %p1481_p4 }
   0xe   :  { %p1484_p7 = pnand %p1483_p6, %p1477_p3 }
  0x10   :  { %1487 = shalt.err (!%p1484_p7)
}
  0x11   :  { %18 = dma.hbm_to_vmem [thread:$0]  %s1682_s0, 128, %s16_s10, [#allocation3]  }
  0x12   :  { %s1488_s25 = scalar_lea.hbm %s1683_s1, 7040 }
  0x13   :  { %p1489_p8 = scmp.ne.s32.totalorder %s1683_s1, %s1488_s25  ;;  %p1492_p9 = scmp.lt.u32.totalorder %s1488_s25, %s1683_s1 }
  0x15   :  { %p1494_p10 = pnand %p1492_p9, %p1489_p8 }
  0x17   :  { %1497 = shalt.err (!%p1494_p10)
}
  0x18   :  { %s1498_s30 = scalar_lea.vmem %s1542_s12, 7040  ;;  %p1503_p12 = scmp.lt.s32.totalorder %s1542_s12, %s1542_s12 }
  0x19   :  { %p1499_p11 = scmp.ne.s32.totalorder %s1542_s12, %s1498_s30  ;;  %p1504_p13 = scmp.lt.s32.totalorder %s1498_s30, %s1498_s30 }
  0x1b   :  { %p1505_p0 = por %p1504_p13, %p1503_p12 }
  0x1d   :  { %p1506_p1 = pnand %p1505_p0, %p1499_p11 }
  0x1f   :  { %1509 = shalt.err (!%p1506_p1)
}
  0x20   :  { %s1516_s0 = smov 128   ;;  %s1517_s3 = smov 8  }
  0x21   :  { %30 = dma.hbm_to_vmem [thread:$0]  %s1683_s1, 7040, %s1542_s12, [#allocation5], %s1516_s0, %s1516_s0, %s1517_s3  }
  0x22   :  { %1510 = dma.done.wait [#allocation3], 128  }
  0x23   :  { %1511 = vsyncadd [#allocation3], 4294967168 }
  0x24   :  { %1512 = dma.done.wait [#allocation5], 7040  }
  0x25   :  { %1513 = vsyncadd [#allocation5], 4294960256  ;;  %v1518_v0 = vmov 0.0|0.0   ;;  %vm1519_vm0 = vmmov 0   ;;  %v1520_v1 = vmov 0.0   ;;  %v39_v2 = vld [vmem:[#allocation4] sm:$0xff]  ;;  %v41_v30 = vlaneseq }
  0x26   :  { %1349 = vmatprep.subr.bf16.mxu1 %v1518_v0  ;;  %1209 = vmatprep.mubr.msk.f32.mxu1 %vm1519_vm0, %v1520_v1  ;;  %v40_v3 = vld [vmem:[#allocation4 + $0x8] sm:$0xff]  ;;  %v120_v5 = vld [vmem:[#allocation4 + $0x10] sm:$0xff]  ;;  %v121_v6 = vld [vmem:[#allocation4 + $0x18] sm:$0xff]  ;;  %vm45_vm1 = vcmask 130048   ;;  %v1521_v39 = vmov 64   ;;  %s1522_s1 = smov 63  }
  0x27   :  { %1247 = vmatprep.subr.mxu0 %v1520_v1  ;;  %1249 = vmatprep.mubr.msk.f32.mxu0 %vm1519_vm0, %v1520_v1  ;;  %v1350_v4 = vpack.c.bf16 %v40_v3, %v39_v2  ;;  %v37_v7 = vld [vmem:[#allocation2] sm:$0xff]  ;;  %v1353_v8 = vpack.c.bf16 %v121_v6, %v120_v5  ;;  %v122_v9 = vld [vmem:[#allocation4 + $0x20] sm:$0xff]  ;;  %v123_v10 = vld [vmem:[#allocation4 + $0x28] sm:$0xff]  ;;  %v1591_v31 = vshrl.u32 %v41_v30, 7  ;;  %vm270_vm3 = vcmask 64512   ;;  %s1523_s6 = smov 96  }
  0x28   :  { %v1356_v11 = vpack.c.bf16 %v123_v10, %v122_v9  ;;  %v124_v12 = vld [vmem:[#allocation4 + $0x30] sm:$0xff]  ;;  %v125_v13 = vld [vmem:[#allocation4 + $0x38] sm:$0xff]  ;;  %v126_v15 = vld [vmem:[#allocation4 + $0x40] sm:$0xff]  ;;  %1443 = vset.pattern.permute.xlu0 %v1521_v39  ;;  %vm212_vm5 = vcmask 261120   ;;  %v1524_v10 = vmov 32   ;;  %s1525_s7 = smov 95  }
  0x29   :  { %1351 = vmatpush3.bf16.msra.mxu1 %v1350_v4  ;;  %v1359_v14 = vpack.c.bf16 %v125_v13, %v124_v12  ;;  %v127_v16 = vld [vmem:[#allocation4 + $0x48] sm:$0xff]  ;;  %v128_v18 = vld [vmem:[#allocation4 + $0x50] sm:$0xff]  ;;  %v129_v19 = vld [vmem:[#allocation4 + $0x58] sm:$0xff]  ;;  %v1594_v32 = vsub.s32 0, %v1591_v31  ;;  %vm934_vm15 = vcmask 523520  }
  0x2a   :  { %1352 = vmatprep.subr.bf16.mxu1 %v1518_v0  ;;  %v1362_v17 = vpack.c.bf16 %v127_v16, %v126_v15  ;;  %v1365_v20 = vpack.c.bf16 %v129_v19, %v128_v18  ;;  %v130_v21 = vld [vmem:[#allocation4 + $0x60] sm:$0xff]  ;;  %v131_v22 = vld [vmem:[#allocation4 + $0x68] sm:$0xff]  ;;  %v132_v24 = vld [vmem:[#allocation4 + $0x70] sm:$0xff] }
  0x2b   :  { %v1368_v23 = vpack.c.bf16 %v131_v22, %v130_v21  ;;  %v133_v25 = vld [vmem:[#allocation4 + $0x78] sm:$0xff]  ;;  %v134_v27 = vld [vmem:[#allocation4 + $0x80] sm:$0xff]  ;;  %v135_v28 = vld [vmem:[#allocation4 + $0x88] sm:$0xff] }
  0x2c   :  { %1210 = vmatmul.mubr.msk.f32.vlgmr.msra.gmra.mrb[0].mxu1 %vm45_vm1, %v37_v7  ;;  %v1371_v26 = vpack.c.bf16 %v133_v25, %v132_v24  ;;  %v1374_v29 = vpack.c.bf16 %v135_v28, %v134_v27  ;;  %v1596_v33 = vld [vmem:[#allocation4 + $0x1b0] sm:$0xff]  ;;  %v365_v60 = vld [vmem:[#allocation4 + $0x98] sm:$0xff]  ;;  %v366_v62 = vld [vmem:[#allocation4 + $0xa0] sm:$0xff] }
  0x2d   :  { %1354 = vmatpush3.bf16.msra.mxu1 %v1353_v8  ;;  %1244 = vmatprep.mubr.msk.f32.mxu1 %vm1519_vm0, %v1520_v1  ;;  %v44_v34 = vrot.slane %v1596_v33, %v1594_v32  ;;  %v364_v59 = vld [vmem:[#allocation4 + $0x90] sm:$0xff]  ;;  %v367_v63 = vld [vmem:[#allocation4 + $0xa8] sm:$0xff] }
  0x2e   :  { %1355 = vmatprep.subr.bf16.mxu1 %v1518_v0  ;;  %v1377_v61 = vpack.c.bf16 %v365_v60, %v364_v59  ;;  %v1380_v2 = vpack.c.bf16 %v367_v63, %v366_v62 }
  0x31   :  { %1357 = vmatpush3.bf16.msra.mxu1 %v1356_v11 }
  0x32   :  { %1358 = vmatprep.subr.bf16.mxu1 %v1518_v0 }
  0x35   :  { %1360 = vmatpush3.bf16.msra.mxu1 %v1359_v14 }
  0x36   :  { %1361 = vmatprep.subr.bf16.mxu1 %v1518_v0 }
  0x39   :  { %1363 = vmatpush3.bf16.msra.mxu1 %v1362_v17 }
  0x3a   :  { %1364 = vmatprep.subr.bf16.mxu1 %v1518_v0 }
  0x3d   :  { %1366 = vmatpush3.bf16.msra.mxu1 %v1365_v20 }
  0x3e   :  { %1367 = vmatprep.subr.bf16.mxu1 %v1518_v0 }
  0x41   :  { %1369 = vmatpush3.bf16.msra.mxu1 %v1368_v23 }
  0x42   :  { %1370 = vmatprep.subr.bf16.mxu1 %v1518_v0 }
  0x45   :  { %1372 = vmatpush3.bf16.msra.mxu1 %v1371_v26 }
  0x46   :  { %1373 = vmatprep.subr.bf16.mxu1 %v1518_v0 }
  0x49   :  { %1375 = vmatpush3.bf16.msra.mxu1 %v1374_v29  ;;  %v579_v29 = vld [vmem:[#allocation4 + $0xb0] sm:$0xff] }
  0x4a   :  { %1376 = vmatprep.subr.bf16.mxu1 %v1518_v0 }
  0xff   :  { %v115_v35 = vpop.f32.mrb[0].mxu1 }
 0x100   :  { %v116_v36 = vadd.f32 %v115_v35, %v44_v34  ;;  %v1211_v37 = vpop.f32.mrb[1].mxu1  ;;  %v580_v34 = vld [vmem:[#allocation4 + $0xb8] sm:$0xff] }
 0x101   :  { %v1383_v35 = vpack.c.bf16 %v580_v34, %v579_v29  ;;  %v582_v37 = vld [vmem:[#allocation4 + $0xc8] sm:$0xff] }
 0x102   :  { %v119_v38 = vmax.f32 %v116_v36, 0.0  ;;  %v581_v36 = vld [vmem:[#allocation4 + $0xc0] sm:$0xff]  ;;  %v946_v34 = vld [vmem:[#allocation4 + $0x108] sm:$0xff] }
 0x104   :  { %1245 = vmatmul.mubr.f32.vlgmr.msra.gmra.mrb[2].mxu1 %v119_v38  ;;  %v1386_v38 = vpack.c.bf16 %v582_v37, %v581_v36  ;;  %v947_v36 = vld [vmem:[#allocation4 + $0x110] sm:$0xff]  ;;  %v948_v37 = vld [vmem:[#allocation4 + $0x118] sm:$0xff] }
 0x105   :  { %1260 = vmatprep.mubr.msk.f32.mxu1 %vm1519_vm0, %v1520_v1  ;;  %1378 = vmatpush3.bf16.msra.mxu1 %v1377_v61 }
 0x106   :  { %1379 = vmatprep.subr.bf16.mxu1 %v1518_v0 }
 0x109   :  { %1381 = vmatpush3.bf16.msra.mxu1 %v1380_v2 }
 0x10a   :  { %1394 = vmatprep.subr.bf16.mxu1 %v1518_v0 }
 0x1d7   :  { %v1603_v40 = vpop.f32.mrb[2].mxu1 }
 0x1d8   :  { %223 = vrot.lane.b32.xlu0 %v1603_v40, %s1522_s1  ;;  %v1246_v41 = vpop.f32.mrb[3].mxu1 }
 0x1dc   :  { %259 = vperm.xlu0 %1443, %v1603_v40  }
 0x24a   :  { %v224_v42 = vpop.permute.xlu0 %223 }
 0x24b   :  { %226 = vxpose.xlu1.b32.start.end [1/1] (short) (narrow) %v224_v42, 8 }
 0x25b   :  { %v260_v45 = vpop.permute.xlu0 %259 }
 0x269   :  { %1444 = vset.pattern.permute.xlu1 %v1524_v10 }
 0x2cb   :  { %v242_v43 = vpop.trf.xlu1 }
 0x2cc   :  { %v265_v44 = vrot.slane %v242_v43, %v1594_v32 }
 0x2ce   :  { %v266_v46 = vadd.f32 %v265_v44, %v260_v45 }
 0x2d0   :  { %vm267_vm2 = vcmp.gt.f32.partialorder %v266_v46, 0.0  ;;  %v268_v47 = vmul.f32 0.2, %v266_v46 }
 0x2d2   :  { %v269_v48 = vsel %vm267_vm2, %v266_v46, %v268_v47 }
 0x2d3   :  { %v271_v49 = vsel %vm270_vm3, %v269_v48, -inf }
 0x2d4   :  { %272 = vmax.xlane.f32.xlu1 %v271_v49 }
 0x361   :  { %v273_v50 = vpop.xlane.xlu1 %272 }
 0x362   :  { %v274_v51 = vsub.f32 %v269_v48, %v273_v50 }
 0x364   :  { %v275_v52 = vmul.f32 1.442695, %v274_v51 }
 0x366   :  { %1448 = vpow2.f32 %v275_v52 }
 0x370   :  { %v1449_v53 = vpop.eup %1448 }
 0x371   :  { %v277_v54 = vsel %vm270_vm3, %v1449_v53, 0.0 }
 0x372   :  { %278 = vadd.xlane.f32.xlu0 %v277_v54 }
 0x388   :  { %282 = vrot.lane.b32.xlu0 %v1603_v40, %s1523_s6 }
 0x3ff   :  { %v279_v55 = vpop.xlane.xlu0 %278 }
 0x400   :  { %1450 = vrcp.f32 %v279_v55 }
 0x403   :  { %v283_v56 = vpop.permute.xlu0 %282 }
 0x404   :  { %1248 = vmatpush3.msra.mxu0 %v283_v56 }
 0x405   :  { %1263 = vmatprep.subr.mxu0 %v1520_v1 }
 0x40a   :  { %v1451_v57 = vpop.eup %1450 }
 0x40b   :  { %v281_v58 = vmul.f32 %v1451_v57, %v1449_v53 }
 0x40d   :  { %1250 = vmatmul.mubr.msk.f32.vlgmr.msra.gmra.mrb[0].mxu0 %vm270_vm3, %v281_v58 }
 0x40e   :  { %1265 = vmatprep.mubr.msk.f32.mxu0 %vm1519_vm0, %v1520_v1 }
 0x4e0   :  { %v354_v3 = vpop.f32.mrb[0].mxu0 }
 0x4e1   :  { %v359_v4 = vmin.f32 %v354_v3, 0.0  ;;  %v1251_v5 = vpop.f32.mrb[1].mxu0  ;;  %vm358_vm4 = vcmp.gt.f32.partialorder %v354_v3, 0.0 }
 0x4e2   :  { %v797_v5 = vld [vmem:[#allocation4 + $0xe0] sm:$0xff] }
 0x4e3   :  { %v360_v6 = vmul.f32 1.442695, %v359_v4  ;;  %v796_v4 = vld [vmem:[#allocation4 + $0xd8] sm:$0xff] }
 0x4e5   :  { %1452 = vpow2.f32 %v360_v6 }
 0x4ef   :  { %v1453_v7 = vpop.eup %1452 }
 0x4f0   :  { %v1130_v8 = vadd.f32 -1.0, %v1453_v7  ;;  %v798_v7 = vld [vmem:[#allocation4 + $0xe8] sm:$0xff] }
 0x4f2   :  { %v363_v9 = vsel %vm358_vm4, %v354_v3, %v1130_v8  ;;  %v795_v3 = vld [vmem:[#allocation4 + $0xd0] sm:$0xff]  ;;  %v1392_v8 = vpack.c.bf16 %v798_v7, %v797_v5 }
 0x4f3   :  { %1261 = vmatmul.mubr.msk.f32.vlgmr.msra.gmra.mrb[4].mxu1 %vm212_vm5, %v363_v9  ;;  %v1389_v6 = vpack.c.bf16 %v796_v4, %v795_v3  ;;  %v790_v9 = vsub.s32 2, %v1591_v31 }
 0x4f4   :  { %1311 = vmatprep.mubr.msk.f32.mxu1 %vm1519_vm0, %v1520_v1 }
 0x4f5   :  { %v791_v10 = vrot.slane %v1596_v33, %v790_v9 }
 0x5c6   :  { %v437_v11 = vpop.f32.mrb[4].mxu1 }
 0x5c7   :  { %442 = vrot.lane.b32.xlu1 %v437_v11, %s1525_s7  ;;  %v1262_v12 = vpop.f32.mrb[5].mxu1  ;;  %1264 = vmatpush3.msra.mxu0 %v437_v11 }
 0x5c8   :  { %1382 = vmatprep.subr.bf16.mxu0 %v1518_v0 }
 0x5cb   :  { %478 = vperm.xlu1 %1444, %v437_v11  }
 0x639   :  { %v443_v13 = vpop.permute.xlu1 %442 }
 0x63a   :  { %445 = vxpose.xlu1.b32.start.end [1/1] (short) (narrow) %v443_v13, 8 }
 0x64a   :  { %v479_v14 = vpop.permute.xlu1 %478 }
 0x658   :  { %1445 = vset.pattern.permute.xlu1 %v1521_v39 }
 0x6ba   :  { %v461_v15 = vpop.trf.xlu1 }
 0x6bb   :  { %v484_v16 = vrot.slane %v461_v15, %v1594_v32  ;;  %v1526_v15 = vmov 0  }
 0x6bd   :  { %v485_v17 = vadd.f32 %v484_v16, %v479_v14  ;;  %v874_v16 = vsub.s32 5, %v1591_v31 }
 0x6bf   :  { %vm486_vm6 = vcmp.gt.f32.partialorder %v485_v17, 0.0  ;;  %v487_v18 = vmul.f32 0.2, %v485_v17 }
 0x6c1   :  { %v488_v19 = vsel %vm486_vm6, %v485_v17, %v487_v18  ;;  %v875_v17 = vrot.slane %v1596_v33, %v874_v16 }
 0x6c2   :  { %v489_v20 = vsel %vm270_vm3, %v488_v19, -inf }
 0x6c3   :  { %490 = vmax.xlane.f32.xlu0 %v489_v20 }
 0x750   :  { %v491_v21 = vpop.xlane.xlu0 %490 }
 0x751   :  { %v492_v22 = vsub.f32 %v488_v19, %v491_v21 }
 0x753   :  { %v493_v23 = vmul.f32 1.442695, %v492_v22  ;;  %v921_v22 = vand.u32 127, %v41_v30  ;;  %v945_v30 = vld [vmem:[#allocation4 + $0x100] sm:$0xff] }
 0x755   :  { %1454 = vpow2.f32 %v493_v23  ;;  %vm924_vm9 = vcmp.lt.s32.totalorder %v921_v22, %v1591_v31 }
 0x75f   :  { %v1455_v24 = vpop.eup %1454 }
 0x760   :  { %v495_v25 = vsel %vm270_vm3, %v1455_v24, 0.0 }
 0x761   :  { %496 = vadd.xlane.f32.xlu0 %v495_v25 }
 0x7ee   :  { %v497_v26 = vpop.xlane.xlu0 %496 }
 0x7ef   :  { %1456 = vrcp.f32 %v497_v26 }
 0x7f9   :  { %v1457_v27 = vpop.eup %1456 }
 0x7fa   :  { %v499_v28 = vmul.f32 %v1457_v27, %v1455_v24  ;;  %v943_v27 = vld [vmem:[#allocation4 + $0xf0] sm:$0xff] }
 0x7fc   :  { %1266 = vmatmul.mubr.msk.f32.vlgmr.msra.gmra.mrb[2].mxu0 %vm270_vm3, %v499_v28  ;;  %v944_v28 = vld [vmem:[#allocation4 + $0xf8] sm:$0xff] }
 0x7fd   :  { %1276 = vmatprep.mubr.msk.f32.mxu0 %vm1519_vm0, %v1520_v1  ;;  %1384 = vmatpush3.bf16.msra.mxu0 %v1383_v35  ;;  %v1395_v29 = vpack.c.bf16 %v944_v28, %v943_v27  ;;  %v1398_v35 = vpack.c.bf16 %v946_v34, %v945_v30  ;;  %v1045_v30 = vrot.slane %v1596_v33, 4 }
 0x7fe   :  { %1385 = vmatprep.subr.bf16.mxu0 %v1518_v0 }
 0x7ff   :  { %1396 = vmatpush3.bf16.msra.mxu1 %v1395_v29 }
 0x800   :  { %1397 = vmatprep.subr.bf16.mxu1 %v1518_v0 }
 0x801   :  { %1387 = vmatpush3.bf16.msra.mxu0 %v1386_v38  ;;  %v1401_v38 = vpack.c.bf16 %v948_v37, %v947_v36 }
 0x802   :  { %1279 = vmatprep.subr.mxu0 %v1520_v1 }
 0x803   :  { %1399 = vmatpush3.bf16.msra.mxu1 %v1398_v35 }
 0x804   :  { %1400 = vmatprep.subr.bf16.mxu1 %v1518_v0 }
 0x807   :  { %1402 = vmatpush3.bf16.msra.mxu1 %v1401_v38 }
 0x808   :  { %1403 = vmatprep.subr.bf16.mxu1 %v1518_v0 }
 0x8cf   :  { %v569_v39 = vpop.f32.mrb[2].mxu0 }
 0x8d0   :  { %v574_v41 = vmin.f32 %v569_v39, 0.0  ;;  %v1267_v42 = vpop.f32.mrb[3].mxu0  ;;  %vm573_vm7 = vcmp.gt.f32.partialorder %v569_v39, 0.0 }
 0x8d2   :  { %v575_v43 = vmul.f32 1.442695, %v574_v41  ;;  %v950_v41 = vld [vmem:[#allocation4 + $0x128] sm:$0xff] }
 0x8d4   :  { %1458 = vpow2.f32 %v575_v43  ;;  %v1029_v43 = vld [vmem:[#allocation4 + $0x130] sm:$0xff] }
 0x8de   :  { %v1459_v44 = vpop.eup %1458 }
 0x8df   :  { %v1133_v45 = vadd.f32 -1.0, %v1459_v44  ;;  %v1030_v44 = vld [vmem:[#allocation4 + $0x138] sm:$0xff] }
 0x8e1   :  { %v578_v46 = vsel %vm573_vm7, %v569_v39, %v1133_v45  ;;  %v949_v39 = vld [vmem:[#allocation4 + $0x120] sm:$0xff] }
 0x8e2   :  { %1277 = vmatmul.mubr.msk.f32.vlgmr.msra.gmra.mrb[4].mxu0 %vm212_vm5, %v578_v46  ;;  %v1404_v42 = vpack.c.bf16 %v950_v41, %v949_v39  ;;  %v1031_v45 = vld [vmem:[#allocation4 + $0x140] sm:$0xff]  ;;  %v1407_v46 = vpack.c.bf16 %v1030_v44, %v1029_v43 }
 0x8e3   :  { %1281 = vmatprep.mubr.msk.f32.mxu0 %vm1519_vm0, %v1520_v1 }
 0x8e4   :  { %1405 = vmatpush3.bf16.msra.mxu1 %v1404_v42 }
 0x9b5   :  { %v652_v47 = vpop.f32.mrb[4].mxu0 }
 0x9b6   :  { %693 = vperm.xlu1 %1445, %v652_v47   ;;  %657 = vrot.lane.b32.xlu0 %v652_v47, %s1522_s1  ;;  %v1278_v48 = vpop.f32.mrb[5].mxu0 }
 0x9b7   :  { %1280 = vmatpush3.msra.mxu0 %v652_v47  ;;  %v1032_v47 = vld [vmem:[#allocation4 + $0x148] sm:$0xff] }
 0x9b8   :  { %1388 = vmatprep.subr.bf16.mxu0 %v1518_v0  ;;  %v1410_v48 = vpack.c.bf16 %v1032_v47, %v1031_v45 }
 0x9ba   :  { %1446 = vset.pattern.permute.xlu1 %v1526_v15 }
 0xa28   :  { %v658_v49 = vpop.permute.xlu0 %657 }
 0xa29   :  { %660 = vxpose.xlu0.b32.start.end [1/1] (short) (narrow) %v658_v49, 8  ;;  %v1033_v49 = vld [vmem:[#allocation4 + $0x150] sm:$0xff] }
 0xa35   :  { %v694_v52 = vpop.permute.xlu1 %693 }
 0xa52   :  { %1447 = vset.pattern.permute.xlu0 %v1526_v15 }
 0xaa9   :  { %v676_v50 = vpop.trf.xlu0 }
 0xaaa   :  { %v699_v51 = vrot.slane %v676_v50, %v1594_v32  ;;  %v1034_v50 = vld [vmem:[#allocation4 + $0x158] sm:$0xff] }
 0xaac   :  { %v700_v53 = vadd.f32 %v699_v51, %v694_v52  ;;  %v1413_v51 = vpack.c.bf16 %v1034_v50, %v1033_v49  ;;  %v1035_v52 = vld [vmem:[#allocation4 + $0x160] sm:$0xff] }
 0xaae   :  { %vm701_vm8 = vcmp.gt.f32.partialorder %v700_v53, 0.0  ;;  %v702_v54 = vmul.f32 0.2, %v700_v53 }
 0xab0   :  { %v703_v55 = vsel %vm701_vm8, %v700_v53, %v702_v54  ;;  %v1036_v53 = vld [vmem:[#allocation4 + $0x168] sm:$0xff] }
 0xab1   :  { %v704_v56 = vsel %vm270_vm3, %v703_v55, -inf  ;;  %v1416_v54 = vpack.c.bf16 %v1036_v53, %v1035_v52 }
 0xab2   :  { %705 = vmax.xlane.f32.xlu1 %v704_v56  ;;  %v1038_v56 = vld [vmem:[#allocation4 + $0x178] sm:$0xff] }
 0xb3f   :  { %v706_v57 = vpop.xlane.xlu1 %705 }
 0xb40   :  { %v707_v58 = vsub.f32 %v703_v55, %v706_v57  ;;  %v1037_v55 = vld [vmem:[#allocation4 + $0x170] sm:$0xff] }
 0xb41   :  { %v1419_v57 = vpack.c.bf16 %v1038_v56, %v1037_v55 }
 0xb42   :  { %v708_v59 = vmul.f32 1.442695, %v707_v58  ;;  %v1039_v58 = vld [vmem:[#allocation4 + $0x180] sm:$0xff] }
 0xb44   :  { %1460 = vpow2.f32 %v708_v59  ;;  %v1040_v59 = vld [vmem:[#allocation4 + $0x188] sm:$0xff] }
 0xb4e   :  { %v1461_v60 = vpop.eup %1460 }
 0xb4f   :  { %v710_v61 = vsel %vm270_vm3, %v1461_v60, 0.0 }
 0xb50   :  { %711 = vadd.xlane.f32.xlu0 %v710_v61  ;;  %v1041_v61 = vld [vmem:[#allocation4 + $0x190] sm:$0xff] }
 0xbdd   :  { %v712_v62 = vpop.xlane.xlu0 %711 }
 0xbde   :  { %1462 = vrcp.f32 %v712_v62  ;;  %v1042_v62 = vld [vmem:[#allocation4 + $0x198] sm:$0xff] }
 0xbe8   :  { %v1463_v63 = vpop.eup %1462 }
 0xbe9   :  { %v714_v2 = vmul.f32 %v1463_v63, %v1461_v60  ;;  %v1422_v60 = vpack.c.bf16 %v1040_v59, %v1039_v58  ;;  %v1425_v63 = vpack.c.bf16 %v1042_v62, %v1041_v61 }
 0xbeb   :  { %1282 = vmatmul.mubr.msk.f32.vlgmr.msra.gmra.mrb[6].mxu0 %vm270_vm3, %v714_v2  ;;  %v208_v2 = vsub.s32 1, %v1591_v31 }
 0xbec   :  { %1292 = vmatprep.mubr.msk.f32.mxu0 %vm1519_vm0, %v1520_v1  ;;  %1390 = vmatpush3.bf16.msra.mxu0 %v1389_v6 }
 0xbed   :  { %1391 = vmatprep.subr.bf16.mxu0 %v1518_v0  ;;  %v209_v3 = vrot.slane %v1596_v33, %v208_v2 }
 0xbef   :  { %v210_v4 = vadd.f32 %v209_v3, %v1603_v40 }
 0xbf0   :  { %1393 = vmatpush3.bf16.msra.mxu0 %v1392_v8 }
 0xbf1   :  { %1406 = vmatprep.subr.bf16.mxu0 %v1518_v0  ;;  %v211_v5 = vmax.f32 %v210_v4, 0.0 }
 0xbf3   :  { %v213_v6 = vsel %vm212_vm5, %v211_v5, 0.0 }
 0xbf4   :  { %v214_v7 = vrot.slane %v213_v6, 4 }
 0xbf6   :  { %v215_v8 = vadd.f32 %v214_v7, %v213_v6 }
 0xcbe   :  { %v784_v11 = vpop.f32.mrb[6].mxu0 }
 0xcbf   :  { %v1646_v12 = vadd.f32 %v791_v10, %v784_v11  ;;  %v1283_v13 = vpop.f32.mrb[7].mxu0  ;;  %v216_v10 = vrot.slane %v215_v8, 2 }
 0xcc1   :  { %1464 = vtanh.f32 %v1646_v12  ;;  %v794_v11 = vmax.f32 %v1646_v12, 0.0  ;;  %v1043_v12 = vld [vmem:[#allocation4 + $0x1a0] sm:$0xff] }
 0xccb   :  { %v1465_v14 = vpop.eup %1464 }
 0xccc   :  { %1293 = vmatmul.mubr.msk.f32.vlgmr.msra.gmra.mrb[8].mxu0 %vm212_vm5, %v1465_v14  ;;  %v217_v14 = vadd.f32 %v216_v10, %v215_v8 }
 0xccd   :  { %1346 = vmatprep.mubr.msk.f32.mxu0 %vm1519_vm0, %v1520_v1  ;;  %1408 = vmatpush3.bf16.msra.mxu0 %v1407_v46  ;;  %vm954_vm0 = vcmask 523264  }
 0xcce   :  { %1409 = vmatprep.subr.bf16.mxu0 %v1518_v0 }
 0xcd1   :  { %1411 = vmatpush3.bf16.msra.mxu0 %v1410_v48 }
 0xcd2   :  { %1412 = vmatprep.subr.bf16.mxu0 %v1518_v0 }
 0xcd5   :  { %1414 = vmatpush3.bf16.msra.mxu0 %v1413_v51 }
 0xcd6   :  { %1415 = vmatprep.subr.bf16.mxu0 %v1518_v0 }
 0xcd9   :  { %1417 = vmatpush3.bf16.msra.mxu0 %v1416_v54 }
 0xcda   :  { %1418 = vmatprep.subr.bf16.mxu0 %v1518_v0 }
 0xcdd   :  { %1420 = vmatpush3.bf16.msra.mxu0 %v1419_v57 }
 0xcde   :  { %1421 = vmatprep.subr.bf16.mxu0 %v1518_v0 }
 0xce1   :  { %1423 = vmatpush3.bf16.msra.mxu0 %v1422_v60 }
 0xce2   :  { %1424 = vmatprep.subr.bf16.mxu0 %v1518_v0 }
 0xce5   :  { %1426 = vmatpush3.bf16.msra.mxu0 %v1425_v63 }
 0xce6   :  { %1427 = vmatprep.subr.bf16.mxu0 %v1518_v0 }
 0xd9f   :  { %v868_v18 = vpop.f32.mrb[8].mxu0 }
 0xda0   :  { %v876_v19 = vadd.f32 %v875_v17, %v868_v18  ;;  %v1294_v20 = vpop.f32.mrb[9].mxu0  ;;  %v218_v17 = vrot.slane %v217_v14, 1 }
 0xda2   :  { %915 = vperm.xlu1 %1446, %v876_v19  }
 0xdcb   :  { %877 = vxpose.xlu1.b32.start.end [1/1] (short) (narrow) %v876_v19, 8  ;;  %v219_v19 = vadd.f32 %v218_v17, %v217_v14 }
 0xdcd   :  { %v221_v22 = vmul.f32 0.125, %v219_v19 }
 0xe21   :  { %v916_v21 = vpop.permute.xlu1 %915 }
 0xe4b   :  { %v893_v23 = vpop.trf.xlu1 }
 0xe4c   :  { %v912_v24 = vrot.slane %v893_v23, %v1594_v32 }
 0xe4e   :  { %vm918_vm10 = vcmp.gt.f32.partialorder %v912_v24, %v916_v21  ;;  %vm919_vm11 = vcmp.eq.f32.partialorder %v912_v24, %v916_v21  ;;  %v1044_v24 = vld [vmem:[#allocation4 + $0x1a8] sm:$0xff] }
 0xe4f   :  { %vm925_vm12 = vmand %vm919_vm11, %vm924_vm9 }
 0xe50   :  { %vm926_vm13 = vmor %vm918_vm10, %vm925_vm12 }
 0xe51   :  { %v927_v25 = vsel %vm926_vm13, 1.0, %v1520_v1 }
 0xe52   :  { %v928_v26 = vsel %vm270_vm3, %v927_v25, 0.0  ;;  %v1428_v25 = vpack.c.bf16 %v1044_v24, %v1043_v12 }
 0xe53   :  { %929 = vadd.xlane.f32.xlu0 %v928_v26 }
 0xe54   :  { %1429 = vmatpush3.bf16.msra.mxu0 %v1428_v25 }
 0xee0   :  { %v930_v9 = vpop.xlane.xlu0 %929 }
 0xee1   :  { %vm931_vm14 = vcmp.lt.f32.partialorder %v930_v9, 4.0 }
 0xee2   :  { %v932_v13 = vsel %vm931_vm14, 0.25, %v1520_v1  ;;  %v952_v1 = vrot.slane %v1596_v33, 3 }
 0xee3   :  { %v933_v0 = vmul.f32 %v932_v13, %v794_v11 }
 0xee5   :  { %v935_v31 = vsel %vm934_vm15, %v933_v0, 0.0 }
 0xee6   :  { %v936_v15 = vrot.slane %v935_v31, 4 }
 0xee8   :  { %v937_v16 = vadd.f32 %v936_v15, %v935_v31 }
 0xeea   :  { %v938_v40 = vrot.slane %v937_v16, 2 }
 0xeec   :  { %v939_v18 = vadd.f32 %v938_v40, %v937_v16 }
 0xeee   :  { %v940_v20 = vrot.slane %v939_v18, 1 }
 0xef0   :  { %v941_v21 = vadd.f32 %v940_v20, %v939_v18 }
 0xef2   :  { %v942_v23 = vsel %vm212_vm5, %v221_v22, %v941_v21 }
 0xef3   :  { %1312 = vmatmul.mubr.msk.f32.vlgmr.msra.gmra.mrb[6].mxu1 %vm954_vm0, %v942_v23 }
 0xfc6   :  { %v1024_v26 = vpop.f32.mrb[6].mxu1 }
 0xfc7   :  { %v1025_v27 = vadd.f32 %v1024_v26, %v952_v1  ;;  %v1313_v28 = vpop.f32.mrb[7].mxu1 }
 0xfc9   :  { %v1028_v29 = vmax.f32 %v1025_v27, 0.0 }
 0xfcb   :  { %1347 = vmatmul.mubr.f32.vlgmr.msra.gmra.mrb[10].mxu0 %v1028_v29 }
0x109e   :  { %v1113_v34 = vpop.f32.mrb[10].mxu0 }
0x109f   :  { %v1114_v35 = vadd.f32 %v1113_v34, %v1045_v30  ;;  %v1348_v36 = vpop.f32.mrb[11].mxu0 }
0x10a1   :  { %v1120_v37 = vrot.slane %v1114_v35, %v1594_v32 }
0x10a3   :  { %1121 = vst [vmem:[%s1684_s2] sm:$0xff] %v1120_v37 }
0x10a4   :  { %1126 = vsyncpa [#allocation3], 1 }
0x10a5   :  { %1127 = vsyncpa [#allocation5], 1 }

</bundles_post_ra>
